<compile_context>
chip_gen: v6e
topology: v6e:2x2x1
jax: 0.10.0
libtpu: 0.0.40
codegen_flags: <defaults>
</compile_context>

<pallas_src>
import functools

import jax
import jax.numpy as jnp
from jax.experimental import pallas as pl
from jax.experimental.pallas import tpu as pltpu

_LANE = 128     # lane width for the (tiny, resident) weight padding
_SUBLANE = 16   # bf16-safe sublane granularity for row tiles


def _round_up(n, m):
    return ((n + m - 1) // m) * m


def _vmem_capacity_bytes():
    # Generation-aware VMEM budget (v5e/v6e: 128 MiB, v7x: 64 MiB per TC).
    # Conservative fallback if the query API is unavailable.
    try:
        return int(pltpu.get_tpu_info().vmem_capacity_bytes)
    except Exception:
        return 64 * 1024 * 1024


# ----------------------------- Pallas kernel --------------------------------
def _seg_kernel(x_ref, w1_ref, b1_ref, q_ref, mask_ref):
    """Per-point MLP backbone + mask head for one tile of points.

    x_ref    : (TM, C_in)  f32  point-feature tile (cast to bf16 in-kernel)
    w1_ref   : (C_in, Hp)  bf16 backbone weight (resident, H zero-padded)
    b1_ref   : (1, Hp)     f32  backbone bias (resident)
    q_ref    : (Hp, Q)     bf16 query embeddings, transposed (resident)
    mask_ref : (TM, Q)     f32  output mask-logit tile (true Q, no padding)
    """
    # Cast activations to bf16 on the VPU (cheaper than a wrapper-side pass).
    x = x_ref[...].astype(w1_ref.dtype)
    # Backbone: h = relu(x @ W1 + b1)  -> MXU (bf16 x bf16 -> f32 acc) + VPU.
    h = jnp.dot(x, w1_ref[...], preferred_element_type=jnp.float32)
    h = jnp.maximum(h + b1_ref[...], 0.0)
    # Mask head: mask_logits = h @ Q^T  -> MXU.  Padded H columns are exactly
    # zero (zero weight cols, zero bias) so they contribute nothing.
    mask_ref[...] = jnp.dot(
        h.astype(q_ref.dtype), q_ref[...], preferred_element_type=jnp.float32
    )


# ----------------------------- wrapper ---------------------------------------
def instance_segmentation_forward(
    x, params, *, tile_rows=None, compute_dtype=jnp.bfloat16
):
    """Forward pass.

    x      : (B, N, C_in) float32 point features
    params : dict with w1 (C_in,H), b1 (H,), queries (Q,H),
             wc (H,num_classes), bc (num_classes,)
    returns: {"pred_logits": (Q, num_classes), "pred_masks": (B, N, Q)}
    """
    B, N, C_in = x.shape
    w1 = params["w1"]
    b1 = params["b1"]
    queries = params["queries"]
    H = w1.shape[1]
    Q = queries.shape[0]
    rows = B * N

    # Pad only the resident weights' hidden dim (exact; negligible bytes).
    H_pad = _round_up(H, _LANE)

    # --- VMEM-aware, generation-aware row-tile selection ---------------------
    # Resident operands are double-buffered by the pipeline (constant index_map
    # still allocates 2 buffers) -> count x2.
    resident_bytes = 2 * (C_in * H_pad * 2 + H_pad * 4 + H_pad * Q * 2)
    # Per row of tile: double-buffered x (f32) + out (f32) + one h intermediate.
    per_row_bytes = 2 * C_in * 4 + 2 * Q * 4 + H_pad * 4

    vmem_cap = _vmem_capacity_bytes()
    vmem_limit = min(vmem_cap * 3 // 4, 96 * 1024 * 1024)   # 48 MiB on v7x
    if tile_rows is None:
        tile_rows = 8192 if vmem_cap > (96 << 20) else 4096  # v5e/v6e vs v7x

    tile_budget = max(vmem_limit - resident_bytes - (4 << 20),
                      per_row_bytes * _SUBLANE)
    tm_vmem = max(_SUBLANE, (tile_budget // per_row_bytes) // _SUBLANE * _SUBLANE)
    # Keep >= 2 grid steps when possible so dimension_semantics=("parallel",)
    # actually splits the row axis across v7x's two TensorCores.
    if rows >= 2 * _SUBLANE:
        tm_rows = _round_up(pl.cdiv(rows, 2), _SUBLANE)
    else:
        tm_rows = _round_up(max(rows, 1), _SUBLANE)
    tm = max(_SUBLANE, min(_round_up(tile_rows, _SUBLANE), tm_rows, tm_vmem))
    grid = (pl.cdiv(rows, tm),)   # partial trailing block handled by Pallas

    # --- operands: x streamed raw; only tiny weights padded / cast ----------
    x_flat = x.reshape(rows, C_in)                      # free reshape, stays f32
    w1_p = (
        jnp.zeros((C_in, H_pad), compute_dtype)
        .at[:, :H]
        .set(w1.astype(compute_dtype))
    )
    b1_p = jnp.zeros((1, H_pad), jnp.float32).at[0, :H].set(b1.astype(jnp.float32))
    q_p = (
        jnp.zeros((H_pad, Q), compute_dtype)
        .at[:H, :]
        .set(queries.T.astype(compute_dtype))
    )

    cost = pl.CostEstimate(
        flops=2 * rows * (C_in * H_pad + H_pad * Q),
        transcendentals=0,
        bytes_accessed=(rows * C_in * 4 + rows * Q * 4
                        + C_in * H_pad * 2 + H_pad * 4 + H_pad * Q * 2),
    )

    pred_masks_flat = pl.pallas_call(
        _seg_kernel,
        out_shape=jax.ShapeDtypeStruct((rows, Q), jnp.float32),
        grid_spec=pltpu.PrefetchScalarGridSpec(
            num_scalar_prefetch=0,
            grid=grid,
            in_specs=[
                pl.BlockSpec((tm, C_in), lambda i: (i, 0)),     # x tile (f32)
                pl.BlockSpec((C_in, H_pad), lambda i: (0, 0)),  # w1 (resident)
                pl.BlockSpec((1, H_pad), lambda i: (0, 0)),     # b1 (resident)
                pl.BlockSpec((H_pad, Q), lambda i: (0, 0)),     # queries^T
            ],
            out_specs=pl.BlockSpec((tm, Q), lambda i: (i, 0)),  # true-Q output
        ),
        compiler_params=pltpu.CompilerParams(
            dimension_semantics=("parallel",),   # row tiles shard across TCs
            vmem_limit_bytes=vmem_limit,
        ),
        cost_estimate=cost,
    )(x_flat, w1_p, b1_p, q_p)

    pred_masks = pred_masks_flat.reshape(B, N, Q)       # free (split leading dim)

    # Classification head is tiny (Q x H @ H x num_classes) -> plain JAX glue.
    pred_logits = queries @ params["wc"] + params["bc"]

    return {"pred_logits": pred_logits, "pred_masks": pred_masks}


# ----------------------------- parameter init -------------------------------
def init_params(key, c_in, hidden, num_queries, num_classes):
    k1, k2, k3, k4 = jax.random.split(key, 4)
    return {
        "w1": jax.random.normal(k1, (c_in, hidden), jnp.float32) * 0.1,
        "b1": jnp.zeros((hidden,), jnp.float32),
        "queries": jax.random.normal(k2, (num_queries, hidden), jnp.float32) * 0.1,
        "wc": jax.random.normal(k3, (hidden, num_classes), jnp.float32) * 0.1,
        "bc": jnp.zeros((num_classes,), jnp.float32),
    }


# ---------------------------------- main -------------------------------------
if __name__ == "__main__":
    B, N, C_in = 2, 128, 16       # batch, points, input feature channels
    H, Q, NUM_CLASSES = 32, 8, 4  # hidden dim, queries, classes

    key = jax.random.PRNGKey(0)
    kx, kp = jax.random.split(key)

    x = jax.random.normal(kx, (B, N, C_in), jnp.float32)
    # raw_coordinates / point2segment / clip_* are passthrough args in the
    # reference wrapper; not needed by the synthetic head.
    params = init_params(kp, C_in, H, Q, NUM_CLASSES)

    fwd = jax.jit(functools.partial(instance_segmentation_forward))
    out = fwd(x, params)
    jax.block_until_ready(out)

    # Reference check against plain JAX using the same bf16 compute + f32 acc.
    x_bf = x.reshape(B * N, C_in).astype(jnp.bfloat16)
    w1_bf = params["w1"].astype(jnp.bfloat16)
    qT_bf = params["queries"].T.astype(jnp.bfloat16)
    h_ref = jnp.maximum(
        jnp.dot(x_bf, w1_bf, preferred_element_type=jnp.float32) + params["b1"], 0.0
    )
    masks_ref = jnp.dot(
        h_ref.astype(jnp.bfloat16), qT_bf, preferred_element_type=jnp.float32
    ).reshape(B, N, Q)

    assert out["pred_masks"].shape == (B, N, Q)
    assert out["pred_logits"].shape == (Q, NUM_CLASSES)
    assert jnp.allclose(out["pred_masks"], masks_ref, atol=1e-3, rtol=1e-3)
    # Sanity vs full-f32 math (bf16 rounding tolerance — deliberate inference
    # precision trade-off).
    h_f32 = jnp.maximum(x.reshape(B * N, C_in) @ params["w1"] + params["b1"], 0.0)
    masks_f32 = (h_f32 @ params["queries"].T).reshape(B, N, Q)
    assert jnp.allclose(out["pred_masks"], masks_f32, atol=5e-2, rtol=5e-2)

    print("KERNEL_OK")
</pallas_src>

<mosaic_0001>
module attributes {stable_mosaic.version = 11 : i64} {
  func.func @_seg_kernel(%arg0: i32, %arg1: memref<128x16xf32, #tpu.memory_space<vmem>>, %arg2: memref<16x128xbf16, #tpu.memory_space<vmem>>, %arg3: memref<1x128xf32, #tpu.memory_space<vmem>>, %arg4: memref<128x8xbf16, #tpu.memory_space<vmem>>, %arg5: memref<128x8xf32, #tpu.memory_space<vmem>>) attributes {dimension_semantics = [#tpu.dimension_semantics<parallel>], iteration_bounds = array<i64: 2>, scalar_prefetch = 0 : i64, scratch_operands = 0 : i64, tpu.core_type = #tpu.core_type<tc>, window_params = [{transform_indices = @transform_0, window_bounds = array<i64: 128, 16>}, {pipeline_mode = #tpu.pipeline_mode<synchronous>, transform_indices = @transform_1, window_bounds = array<i64: 16, 128>}, {pipeline_mode = #tpu.pipeline_mode<synchronous>, transform_indices = @transform_2, window_bounds = array<i64: 1, 128>}, {pipeline_mode = #tpu.pipeline_mode<synchronous>, transform_indices = @transform_3, window_bounds = array<i64: 128, 8>}, {transform_indices = @transform_4, window_bounds = array<i64: 128, 8>}]} {
    %c0 = arith.constant 0 : index
    %c0_0 = arith.constant 0 : index
    %0 = vector.load %arg1[%c0, %c0_0] : memref<128x16xf32, #tpu.memory_space<vmem>>, vector<128x16xf32>
    %1 = arith.truncf %0 : vector<128x16xf32> to vector<128x16xbf16>
    %c0_1 = arith.constant 0 : index
    %c0_2 = arith.constant 0 : index
    %2 = vector.load %arg2[%c0_1, %c0_2] : memref<16x128xbf16, #tpu.memory_space<vmem>>, vector<16x128xbf16>
    %cst = arith.constant dense<0.000000e+00> : vector<128x128xf32>
    %3 = tpu.matmul %1, %2, %cst {dimension_numbers = #tpu.dot_dimension_numbers<[1], [0], [0], [1], [0, 0, 1, 1], [], []>} : vector<128x16xbf16>, vector<16x128xbf16>, vector<128x128xf32> -> vector<128x128xf32>
    %c0_3 = arith.constant 0 : index
    %c0_4 = arith.constant 0 : index
    %4 = vector.load %arg3[%c0_3, %c0_4] : memref<1x128xf32, #tpu.memory_space<vmem>>, vector<1x128xf32>
    %5 = vector.broadcast %4 : vector<1x128xf32> to vector<128x128xf32>
    %6 = arith.addf %3, %5 : vector<128x128xf32>
    %cst_5 = arith.constant 0.000000e+00 : f32
    %7 = vector.broadcast %cst_5 : f32 to vector<128x128xf32>
    %8 = arith.maximumf %6, %7 : vector<128x128xf32>
    %9 = arith.truncf %8 : vector<128x128xf32> to vector<128x128xbf16>
    %c0_6 = arith.constant 0 : index
    %c0_7 = arith.constant 0 : index
    %10 = vector.load %arg4[%c0_6, %c0_7] : memref<128x8xbf16, #tpu.memory_space<vmem>>, vector<128x8xbf16>
    %cst_8 = arith.constant dense<0.000000e+00> : vector<128x8xf32>
    %11 = tpu.matmul %9, %10, %cst_8 {dimension_numbers = #tpu.dot_dimension_numbers<[1], [0], [0], [1], [0, 0, 1, 1], [], []>} : vector<128x128xbf16>, vector<128x8xbf16>, vector<128x8xf32> -> vector<128x8xf32>
    %c0_9 = arith.constant 0 : index
    %c0_10 = arith.constant 0 : index
    %12 = vector.load %arg5[%c0_9, %c0_10] : memref<128x8xf32, #tpu.memory_space<vmem>>, vector<128x8xf32>
    tpu.vector_store %arg5[%c0_9, %c0_10], %11 {strides = array<i32>} : memref<128x8xf32, #tpu.memory_space<vmem>>, vector<128x8xf32>,
    return
  }
  func.func @transform_0(%arg0: i32) -> (i32, i32) {
    %c0_i32 = arith.constant 0 : i32
    %c0_i32_0 = arith.constant 0 : i32
    return %arg0, %c0_i32 : i32, i32
  }
  func.func @transform_1(%arg0: i32) -> (i32, i32) {
    %c0_i32 = arith.constant 0 : i32
    %c0_i32_0 = arith.constant 0 : i32
    %c0_i32_1 = arith.constant 0 : i32
    return %c0_i32, %c0_i32_0 : i32, i32
  }
  func.func @transform_2(%arg0: i32) -> (i32, i32) {
    %c0_i32 = arith.constant 0 : i32
    %c0_i32_0 = arith.constant 0 : i32
    %c0_i32_1 = arith.constant 0 : i32
    return %c0_i32, %c0_i32_0 : i32, i32
  }
  func.func @transform_3(%arg0: i32) -> (i32, i32) {
    %c0_i32 = arith.constant 0 : i32
    %c0_i32_0 = arith.constant 0 : i32
    %c0_i32_1 = arith.constant 0 : i32
    return %c0_i32, %c0_i32_0 : i32, i32
  }
  func.func @transform_4(%arg0: i32) -> (i32, i32) {
    %c0_i32 = arith.constant 0 : i32
    %c0_i32_0 = arith.constant 0 : i32
    return %arg0, %c0_i32 : i32, i32
  }
}

</mosaic_0001>

<bundles_post_ra>
// kernel: instance_segmentation_forward.1
= control target key start
LH: loop header
LB: loop body
LE: loop exit
PB: predicated region body
PF: predicated region fallthrough
CT: control target
= control target key end

     0   :  { %s791_s15 = smov 0   ;;  %s905_s0 = inlined_call_operand.vmem [shape: f32[256,16], index: 0, kind: input, shape index: {}]   ;;  %s906_s1 = inlined_call_operand.vmem [shape: bf16[16,128], index: 1, kind: input, shape index: {}]   ;;  %s907_s2 = inlined_call_operand.vmem [shape: f32[1,128], index: 2, kind: input, shape index: {}]   ;;  %s908_s3 = inlined_call_operand.vmem [shape: bf16[128,8], index: 3, kind: input, shape index: {}]   ;;  %s909_s4 = inlined_call_operand.vmem [shape: f32[256,8], index: 4, kind: output, shape index: {}]  }
   0x1 LB: > { %s621_s16 = sadd.s32 4294967295, %s764_s15   ;;  %p625_p0 = scmp.ge.s32.totalorder %s764_s15, 1  ;;  %s764_s15 = sphi %s791_s15, %s14_s15  }
   0x2   : > { %p163_p1 = scmp.lt.s32.totalorder %s764_s15, 3 }
   0x4   : > { %p164_p2 = pnand %p625_p0, %p163_p1 }
   0x5   : > { %s626_s19 = sshll.u32 (!%p164_p2), %s621_s16, 4 }
   0x6   : > { %167 = sbr.rel (%p164_p2) target bundleno = 448 (0x1c0), region = 36  ;;  %p190_p3 = scmp.lt.s32.totalorder (!%p164_p2), %s626_s19, 31 }
   0xb   : > { %v749_v0 = vld [vmem:[%s906_s1] sm:$0xff]   ;;  %v750_v1 = vld [vmem:[%s908_s3 + $0x38] sm:$0xff]   ;;  %s911_s19 = smov (!%p190_p3, %s626_s19), 31  ;;  %v751_v2 = vld [vmem:[%s908_s3 + $0x30] sm:$0xff]   ;;  %vm241_vm0 = vcmask 130048   ;;  %vm548_vm1 = vcmask 64512  }
   0xc   : > { %675 = vmatprep.subr.bf16.mxu0 %v749_v0  ;;  %725 = vmatprep.subr.bf16.mxu1 %v750_v1  ;;  %s627_s24 = sshll.u32 %s911_s19, 3  ;;  %v752_v3 = vld [vmem:[%s908_s3 + $0x28] sm:$0xff]   ;;  %v753_v15 = vld [vmem:[%s908_s3 + $0x20] sm:$0xff]   ;;  %v754_v20 = vld [vmem:[%s908_s3 + $0x18] sm:$0xff]  }
   0xd   : > { %676 = vmatpush3.bf16.msra.mxu0 %v749_v0  ;;  %733 = vmatpush3.bf16.msra.mxu1 %v750_v1  ;;  %s816_s27 = scalar_lea.vmem %s905_s0, %s627_s24  ;;  %v755_v30 = vld [vmem:[%s908_s3 + $0x10] sm:$0xff]   ;;  %v756_v31 = vld [vmem:[%s908_s3 + $0x8] sm:$0xff]   ;;  %v757_v32 = vld [vmem:[%s908_s3] sm:$0xff]   ;;  %s868_s20 = scalar_lea.vmem %s909_s4, %s627_s24 }
   0xe   : > { %693 = vmatprep.subr.bf16.mxu0 %v750_v1  ;;  %726 = vmatprep.subr.bf16.mxu1 %v751_v2  ;;  %v202_v4 = vld [vmem:[%s816_s27] sm:$0xff]  ;;  %v203_v5 = vld [vmem:[%s816_s27 + $0x8] sm:$0xff]  ;;  %v204_v6 = vld [vmem:[%s816_s27 + $0x10] sm:$0xff] }
   0xf   : > { %v218_v7 = vpack.c.bf16 %v203_v5, %v202_v4  ;;  %v205_v8 = vld [vmem:[%s816_s27 + $0x18] sm:$0xff]  ;;  %v206_v9 = vld [vmem:[%s816_s27 + $0x20] sm:$0xff]  ;;  %v207_v10 = vld [vmem:[%s816_s27 + $0x28] sm:$0xff] }
  0x10   : > { %v219_v11 = vpack.c.bf16 %v205_v8, %v204_v6  ;;  %v220_v12 = vpack.c.bf16 %v207_v10, %v206_v9  ;;  %v208_v13 = vld [vmem:[%s816_s27 + $0x30] sm:$0xff]  ;;  %v209_v14 = vld [vmem:[%s816_s27 + $0x38] sm:$0xff]  ;;  %v210_v16 = vld [vmem:[%s816_s27 + $0x40] sm:$0xff] }
  0x11   : > { %734 = vmatpush3.bf16.msra.mxu1 %v751_v2  ;;  %677 = vmatprep.mubr.msk.bf16.mxu0 %vm241_vm0, %v218_v7  ;;  %v211_v17 = vld [vmem:[%s816_s27 + $0x48] sm:$0xff]  ;;  %v221_v18 = vpack.c.bf16 %v209_v14, %v208_v13  ;;  %v212_v21 = vld [vmem:[%s816_s27 + $0x50] sm:$0xff]  ;;  %v213_v22 = vld [vmem:[%s816_s27 + $0x58] sm:$0xff] }
  0x12   : > { %727 = vmatprep.subr.bf16.mxu1 %v752_v3  ;;  %678 = vmatmul.mubr.msk.bf16.vlgmr.msra.gmra.mxu0 %vm241_vm0, %v219_v11  ;;  %v222_v19 = vpack.c.bf16 %v211_v17, %v210_v16  ;;  %v214_v23 = vld [vmem:[%s816_s27 + $0x60] sm:$0xff]  ;;  %v215_v24 = vld [vmem:[%s816_s27 + $0x68] sm:$0xff]  ;;  %v223_v25 = vpack.c.bf16 %v213_v22, %v212_v21  ;;  %v216_v27 = vld [vmem:[%s816_s27 + $0x70] sm:$0xff] }
  0x13   : > { %681 = vmatprep.mubr.msk.bf16.mxu0 %vm241_vm0, %v220_v12  ;;  %694 = vmatpush3.bf16.msra.mxu0 %v750_v1  ;;  %v224_v26 = vpack.c.bf16 %v215_v24, %v214_v23  ;;  %v217_v28 = vld [vmem:[%s816_s27 + $0x78] sm:$0xff]  ;;  %v630_v35 = vld [vmem:[%s907_s2] ss:$0 sm:$0xff] }
  0x14   : > { %695 = vmatprep.subr.bf16.mxu0 %v751_v2  ;;  %v225_v29 = vpack.c.bf16 %v217_v28, %v216_v27 }
  0x15   : > { %735 = vmatpush3.bf16.msra.mxu1 %v752_v3 }
  0x16   : > { %728 = vmatprep.subr.bf16.mxu1 %v753_v15 }
  0x17   : > { %696 = vmatpush3.bf16.msra.mxu0 %v751_v2 }
  0x18   : > { %697 = vmatprep.subr.bf16.mxu0 %v752_v3 }
  0x19   : > { %736 = vmatpush3.bf16.msra.mxu1 %v753_v15 }
  0x1a   : > { %729 = vmatprep.subr.bf16.mxu1 %v754_v20  ;;  %682 = vmatmul.mubr.msk.bf16.gmra.mxu0 %vm241_vm0, %v221_v18 }
  0x1b   : > { %685 = vmatprep.mubr.msk.bf16.mxu0 %vm241_vm0, %v222_v19  ;;  %698 = vmatpush3.bf16.msra.mxu0 %v752_v3 }
  0x1c   : > { %699 = vmatprep.subr.bf16.mxu0 %v753_v15 }
  0x1d   : > { %737 = vmatpush3.bf16.msra.mxu1 %v754_v20 }
  0x1e   : > { %730 = vmatprep.subr.bf16.mxu1 %v755_v30 }
  0x1f   : > { %700 = vmatpush3.bf16.msra.mxu0 %v753_v15 }
  0x20   : > { %701 = vmatprep.subr.bf16.mxu0 %v754_v20 }
  0x21   : > { %738 = vmatpush3.bf16.msra.mxu1 %v755_v30 }
  0x22   : > { %686 = vmatmul.mubr.msk.bf16.gmra.mxu0 %vm241_vm0, %v223_v25  ;;  %731 = vmatprep.subr.bf16.mxu1 %v756_v31 }
  0x23   : > { %689 = vmatprep.mubr.msk.bf16.mxu0 %vm241_vm0, %v224_v26  ;;  %702 = vmatpush3.bf16.msra.mxu0 %v754_v20 }
  0x24   : > { %703 = vmatprep.subr.bf16.mxu0 %v755_v30 }
  0x25   : > { %739 = vmatpush3.bf16.msra.mxu1 %v756_v31 }
  0x26   : > { %732 = vmatprep.subr.bf16.mxu1 %v757_v32 }
  0x27   : > { %704 = vmatpush3.bf16.msra.mxu0 %v755_v30 }
  0x28   : > { %705 = vmatprep.subr.bf16.mxu0 %v756_v31 }
  0x29   : > { %740 = vmatpush3.bf16.msra.mxu1 %v757_v32 }
  0x2a   : > { %690 = vmatmul.mubr.msk.bf16.gmra.mxu0 %vm241_vm0, %v225_v29 }
  0x2b   : > { %706 = vmatpush3.bf16.msra.mxu0 %v756_v31 }
  0x2c   : > { %707 = vmatprep.subr.bf16.mxu0 %v757_v32 }
  0x2f   : > { %708 = vmatpush3.bf16.msra.mxu0 %v757_v32 }
  0xd2   : > { %v679_v33 = vpop.f32.mrf.mxu0 }
  0xd3   : > { %v309_v39 = vadd.f32 %v679_v33, %v630_v35 }
  0xd4   : > { %v300_v34 = vpop.f32.mrf.mxu0 }
  0xd5   : > { %v301_v37 = vadd.f32 %v630_v35, %v300_v34  ;;  %v365_v46 = vmax.f32 %v309_v39, 0.0 }
  0xd6   : > { %v680_v36 = vpop.f32.mrf.mxu0 }
  0xd7   : > { %v312_v38 = vadd.f32 %v680_v36, %v630_v35  ;;  %v363_v44 = vmax.f32 %v301_v37, 0.0 }
  0xd8   : > { %v303_v40 = vpop.f32.mrf.mxu0 }
  0xd9   : > { %v304_v41 = vadd.f32 %v630_v35, %v303_v40  ;;  %v366_v42 = vmax.f32 %v312_v38, 0.0 }
  0xda   : > { %v683_v43 = vpop.f32.mrf.mxu0 }
  0xdb   : > { %v364_v45 = vmax.f32 %v304_v41, 0.0  ;;  %v380_v49 = vpack.c.bf16 %v366_v42, %v365_v46  ;;  %v325_v53 = vadd.f32 %v683_v43, %v630_v35 }
  0xdc   : > { %v316_v47 = vpop.f32.mrf.mxu0 }
  0xdd   : > { %v379_v48 = vpack.c.bf16 %v364_v45, %v363_v44  ;;  %v317_v51 = vadd.f32 %v630_v35, %v316_v47  ;;  %v369_v60 = vmax.f32 %v325_v53, 0.0 }
  0xde   : > { %v684_v50 = vpop.f32.mrf.mxu0 }
  0xdf   : > { %v328_v52 = vadd.f32 %v684_v50, %v630_v35  ;;  %709 = vmatprep.mubr.bf16.mxu0 %v379_v48  ;;  %v367_v58 = vmax.f32 %v317_v51, 0.0 }
  0xe0   : > { %v319_v54 = vpop.f32.mrf.mxu0  ;;  %710 = vmatmul.mubr.bf16.vlgmr.msra.gmra.mxu0 %v380_v49 }
  0xe1   : > { %v320_v55 = vadd.f32 %v630_v35, %v319_v54  ;;  %v370_v56 = vmax.f32 %v328_v52, 0.0 }
  0xe2   : > { %v687_v57 = vpop.f32.mrf.mxu0 }
  0xe3   : > { %v368_v59 = vmax.f32 %v320_v55, 0.0  ;;  %v382_v63 = vpack.c.bf16 %v370_v56, %v369_v60  ;;  %v341_v3 = vadd.f32 %v687_v57, %v630_v35 }
  0xe4   : > { %v332_v61 = vpop.f32.mrf.mxu0 }
  0xe5   : > { %v381_v62 = vpack.c.bf16 %v368_v59, %v367_v58  ;;  %v333_v1 = vadd.f32 %v630_v35, %v332_v61  ;;  %v373_v10 = vmax.f32 %v341_v3, 0.0 }
  0xe6   : > { %v688_v0 = vpop.f32.mrf.mxu0 }
  0xe7   : > { %v344_v2 = vadd.f32 %v688_v0, %v630_v35  ;;  %713 = vmatprep.mubr.bf16.mxu1 %v381_v62  ;;  %v371_v8 = vmax.f32 %v333_v1, 0.0 }
  0xe8   : > { %v335_v4 = vpop.f32.mrf.mxu0  ;;  %714 = vmatmul.mubr.bf16.vlgmr.msra.gmra.mxu1 %v382_v63 }
  0xe9   : > { %v336_v5 = vadd.f32 %v630_v35, %v335_v4  ;;  %v374_v6 = vmax.f32 %v344_v2, 0.0 }
  0xea   : > { %v691_v7 = vpop.f32.mrf.mxu0 }
  0xeb   : > { %v372_v9 = vmax.f32 %v336_v5, 0.0  ;;  %v384_v13 = vpack.c.bf16 %v374_v6, %v373_v10  ;;  %v357_v17 = vadd.f32 %v691_v7, %v630_v35 }
  0xec   : > { %v348_v11 = vpop.f32.mrf.mxu0 }
  0xed   : > { %v383_v12 = vpack.c.bf16 %v372_v9, %v371_v8  ;;  %v349_v15 = vadd.f32 %v630_v35, %v348_v11  ;;  %v377_v23 = vmax.f32 %v357_v17, 0.0 }
  0xee   : > { %v692_v14 = vpop.f32.mrf.mxu0 }
  0xef   : > { %v360_v16 = vadd.f32 %v692_v14, %v630_v35  ;;  %717 = vmatprep.mubr.bf16.mxu1 %v383_v12  ;;  %v375_v21 = vmax.f32 %v349_v15, 0.0 }
  0xf0   : > { %v351_v18 = vpop.f32.mrf.mxu0  ;;  %718 = vmatmul.mubr.bf16.gmra.mxu1 %v384_v13 }
  0xf1   : > { %v352_v19 = vadd.f32 %v630_v35, %v351_v18  ;;  %v378_v20 = vmax.f32 %v360_v16, 0.0 }
  0xf3   : > { %v376_v22 = vmax.f32 %v352_v19, 0.0  ;;  %v386_v25 = vpack.c.bf16 %v378_v20, %v377_v23 }
  0xf5   : > { %v385_v24 = vpack.c.bf16 %v376_v22, %v375_v21 }
  0xf7   : > { %721 = vmatprep.mubr.bf16.mxu1 %v385_v24 }
  0xf8   : > { %722 = vmatmul.mubr.bf16.gmra.mxu1 %v386_v25 }
 0x1a0   : > { %v711_v26 = vpop.f32.mrf.mxu0 }
 0x1a1   : > { %551 = vst.msk [vmem:[%s868_s20 + $0x10] sm:$0xff] %vm548_vm1, %v711_v26 }
 0x1a2   : > { %v485_v27 = vpop.f32.mrf.mxu0 }
 0x1a3   : > { %549 = vst.msk [vmem:[%s868_s20] sm:$0xff] %vm548_vm1, %v485_v27 }
 0x1a4   : > { %v712_v28 = vpop.f32.mrf.mxu0 }
 0x1a5   : > { %552 = vst.msk [vmem:[%s868_s20 + $0x18] sm:$0xff] %vm548_vm1, %v712_v28 }
 0x1a6   : > { %v488_v29 = vpop.f32.mrf.mxu0 }
 0x1a7   : > { %550 = vst.msk [vmem:[%s868_s20 + $0x8] sm:$0xff] %vm548_vm1, %v488_v29 }
 0x1a8   : > { %v715_v30 = vpop.f32.mrf.mxu1 }
 0x1a9   : > { %555 = vst.msk [vmem:[%s868_s20 + $0x30] sm:$0xff] %vm548_vm1, %v715_v30 }
 0x1aa   : > { %v501_v31 = vpop.f32.mrf.mxu1 }
 0x1ab   : > { %553 = vst.msk [vmem:[%s868_s20 + $0x20] sm:$0xff] %vm548_vm1, %v501_v31 }
 0x1ac   : > { %v716_v32 = vpop.f32.mrf.mxu1 }
 0x1ad   : > { %556 = vst.msk [vmem:[%s868_s20 + $0x38] sm:$0xff] %vm548_vm1, %v716_v32 }
 0x1ae   : > { %v504_v33 = vpop.f32.mrf.mxu1 }
 0x1af   : > { %554 = vst.msk [vmem:[%s868_s20 + $0x28] sm:$0xff] %vm548_vm1, %v504_v33 }
 0x1b0   : > { %v719_v34 = vpop.f32.mrf.mxu1 }
 0x1b1   : > { %559 = vst.msk [vmem:[%s868_s20 + $0x50] sm:$0xff] %vm548_vm1, %v719_v34 }
 0x1b2   : > { %v517_v35 = vpop.f32.mrf.mxu1 }
 0x1b3   : > { %557 = vst.msk [vmem:[%s868_s20 + $0x40] sm:$0xff] %vm548_vm1, %v517_v35 }
 0x1b4   : > { %v720_v36 = vpop.f32.mrf.mxu1 }
 0x1b5   : > { %560 = vst.msk [vmem:[%s868_s20 + $0x58] sm:$0xff] %vm548_vm1, %v720_v36 }
 0x1b6   : > { %v520_v37 = vpop.f32.mrf.mxu1 }
 0x1b7   : > { %558 = vst.msk [vmem:[%s868_s20 + $0x48] sm:$0xff] %vm548_vm1, %v520_v37 }
 0x1b8   : > { %v723_v38 = vpop.f32.mrf.mxu1 }
 0x1b9   : > { %563 = vst.msk [vmem:[%s868_s20 + $0x70] sm:$0xff] %vm548_vm1, %v723_v38 }
 0x1ba   : > { %v533_v39 = vpop.f32.mrf.mxu1 }
 0x1bb   : > { %561 = vst.msk [vmem:[%s868_s20 + $0x60] sm:$0xff] %vm548_vm1, %v533_v39 }
 0x1bc   : > { %v724_v40 = vpop.f32.mrf.mxu1 }
 0x1bd   : > { %564 = vst.msk [vmem:[%s868_s20 + $0x78] sm:$0xff] %vm548_vm1, %v724_v40 }
 0x1be   : > { %v536_v41 = vpop.f32.mrf.mxu1 }
 0x1bf   : > { %562 = vst.msk [vmem:[%s868_s20 + $0x68] sm:$0xff] %vm548_vm1, %v536_v41 }
 0x1c0 PF: > { %s14_s15 = sadd.s32 1, %s764_s15  }
 0x1c1   : > { %p11_p4 = scmp.ge.s32.totalorder %s14_s15, 4  }
 0x1c3   :  { %13 = sbr.rel (!%p11_p4) target bundleno = 1 (0x1), region = 66 }

</bundles_post_ra>
